<compile_context>
chip_gen: v5e
topology: v5e:2x2
jax: 0.10.0
libtpu: 0.0.40
codegen_flags: <defaults>
</compile_context>

<pallas_src>
import functools
import math

import jax
import jax.numpy as jnp
from jax.experimental import pallas as pl
from jax.experimental.pallas import tpu as pltpu


def _round_up(x, m):
    return ((x + m - 1) // m) * m


def _edvr_kernel(p_ref, t_ref, c_ref, out_ref, acc_ref, *, alpha, var_t,
                 spatial_dims, tile_sub, n_sub_valid, blocks_per_split):
    c = pl.program_id(0)          # core / split index ("parallel")
    j = pl.program_id(1)          # reduction step within the split ("arbitrary")

    # init the (8,128) vreg-shaped accumulator (per-core VMEM scratch)
    @pl.when(j == 0)
    def _():
        acc_ref[...] = jnp.zeros_like(acc_ref)

    alpha_f = jnp.float32(alpha)
    var_t_f = jnp.float32(var_t)

    # hot path: per-landmark distance + variance regularization, all elementwise
    sq = None
    reg = None
    for d in range(spatial_dims):                      # static unroll (D = 2 or 3)
        di = p_ref[d].astype(jnp.float32) - t_ref[d].astype(jnp.float32)
        ci = c_ref[d].astype(jnp.float32) - var_t_f
        sq = di * di if sq is None else sq + di * di   # (tile_sub, 128)
        reg = ci * ci if reg is None else reg + ci * ci

    per = jnp.sqrt(sq) + alpha_f * reg                 # (tile_sub, 128)

    # tail masking: sublane rows beyond the real (1024-granule padded) slab carry
    # garbage (partial last block / clamped over-range blocks) -> select 0.
    logical_block = c * blocks_per_split + j
    limit = n_sub_valid - logical_block * tile_sub     # scalar, may be <= 0
    row = jax.lax.broadcasted_iota(jnp.int32, (tile_sub, 128), 0)
    per = jnp.where(row < limit, per, jnp.float32(0.0))

    # fold (tile_sub,128) -> (8,128): sublane-aligned reshape, pure VPU adds
    acc_ref[...] += per.reshape(tile_sub // 8, 8, 128).sum(axis=0)

    # finalize: single full reduce of this core's partial into its own output row
    @pl.when(j == pl.num_programs(1) - 1)
    def _():
        out_ref[0, 0] = jnp.sum(acc_ref[...])


def euclidean_distance_variance_reg(pred, cov, target, *, alpha=1.0, var_t=1.0,
                                    reduction="mean", spatial_dims=2,
                                    max_tile_sub=2048):
    """pred, target: (..., D); cov: (..., D, D). Returns a scalar f32 loss.

    Implements the forward pass of EuclideanDistanceVarianceReg for
    reduction in {'mean', 'sum'}.
    """
    # TODO(synk): reduction='none' (per-landmark vector output) is not implemented
    # in the kernel; only the scalar 'mean'/'sum' reductions are supported.
    if reduction not in ("mean", "sum"):
        raise ValueError(f"Unsupported reduction for the Pallas kernel: {reduction}")
    if spatial_dims not in (2, 3):
        raise ValueError("spatial_dims must be 2 or 3")

    D = spatial_dims
    assert pred.shape[-1] == D and target.shape[-1] == D
    assert cov.shape[-2:] == (D, D)

    lead = pred.shape[:-1]
    N = int(math.prod(lead)) if lead else 1

    p = pred.reshape(N, D)
    t = target.reshape(N, D)
    cdiag = jnp.diagonal(cov.reshape(N, D, D), axis1=-2, axis2=-1)   # (N, D)

    # lane-dense layout: (D, n_sub, 128); landmarks on the 128-lane axis.
    # Pad ONLY to the 8x128 granule; any further over-read is masked in-kernel.
    n_sub = max(_round_up(pl.cdiv(N, 128), 8), 8)
    npad = n_sub * 128

    tile_sub = min(n_sub, int(max_tile_sub))           # multiple of 8 sublanes
    nblocks = pl.cdiv(n_sub, tile_sub)
    num_splits = 2 if nblocks >= 2 else 1              # 2 TCs on v7x; harmless on 1-TC chips
    blocks_per_split = pl.cdiv(nblocks, num_splits)
    grid = (num_splits, blocks_per_split)

    def to_slab(x, fill):
        x = jnp.transpose(x)                            # (D, N), keep HBM dtype
        x = jnp.pad(x, ((0, 0), (0, npad - N)), constant_values=fill)
        return x.reshape(D, n_sub, 128)

    P = to_slab(p, 0.0)
    T = to_slab(t, 0.0)
    # pad covariance diagonal with var_t so padded landmarks contribute exactly 0.
    C = to_slab(cdiag, float(var_t))

    kernel = functools.partial(
        _edvr_kernel,
        alpha=float(alpha),
        var_t=float(var_t),
        spatial_dims=D,
        tile_sub=tile_sub,
        n_sub_valid=n_sub,
        blocks_per_split=blocks_per_split,
    )

    # clamp the logical block index so no fully-out-of-range DMA is ever issued;
    # clamped (duplicate) blocks are zeroed by the in-kernel row mask.
    def in_map(c, j):
        return (0, jnp.minimum(c * blocks_per_split + j, nblocks - 1), 0)

    in_spec = pl.BlockSpec((D, tile_sub, 128), in_map)

    # double-buffered input VMEM for this tiling; 32 MiB == v6e/v7x scoped default,
    # raises v5e past its 16 MiB default, safely under v7x's 64 MiB physical VMEM.
    vmem_limit = 32 * 1024 * 1024

    out = pl.pallas_call(
        kernel,
        out_shape=jax.ShapeDtypeStruct((num_splits, 1), jnp.float32),
        grid_spec=pltpu.PrefetchScalarGridSpec(
            num_scalar_prefetch=0,
            grid=grid,
            in_specs=[in_spec, in_spec, in_spec],
            out_specs=pl.BlockSpec((1, 1), lambda c, j: (c, 0),
                                   memory_space=pltpu.SMEM),
            scratch_shapes=[pltpu.VMEM((8, 128), jnp.float32)],
        ),
        compiler_params=pltpu.CompilerParams(
            dimension_semantics=("parallel", "arbitrary"),
            vmem_limit_bytes=vmem_limit,
        ),
    )(P, T, C)

    total = jnp.sum(out)                                # add the per-core partials
    if reduction == "mean":
        total = total / jnp.float32(N)
    return total


def _reference_loss(pred, cov, target, alpha=1.0, var_t=1.0,
                    reduction="mean", spatial_dims=2):
    reg = sum((cov[..., i, i] - var_t) ** 2 for i in range(spatial_dims))
    dist = jnp.sqrt(jnp.sum((pred - target) ** 2, axis=-1))
    loss = dist + alpha * reg
    if reduction == "mean":
        return jnp.mean(loss)
    return jnp.sum(loss)


if __name__ == "__main__":
    key = jax.random.PRNGKey(0)
    k1, k2, k3, k4, k5, k6 = jax.random.split(key, 6)

    # --- test 1: small shapes, single block, 'mean' ---------------------------------
    B, C, D = 2, 4, 2
    pred = 4.0 * jax.random.normal(k1, (B, C, D), dtype=jnp.float32)
    target = 4.0 * jax.random.normal(k2, (B, C, D), dtype=jnp.float32)
    a = jax.random.normal(k3, (B, C, D, D), dtype=jnp.float32)
    cov = jnp.einsum("bcij,bckj->bcik", a, a) + 0.25 * jnp.eye(D, dtype=jnp.float32)

    alpha, var_t = 2.0, 0.5
    loss_fn = jax.jit(functools.partial(
        euclidean_distance_variance_reg,
        alpha=alpha, var_t=var_t, reduction="mean", spatial_dims=D))
    loss = jax.block_until_ready(loss_fn(pred, cov, target))
    ref = _reference_loss(pred, cov, target, alpha=alpha, var_t=var_t,
                          reduction="mean", spatial_dims=D)
    assert jnp.allclose(loss, ref, rtol=1e-5, atol=1e-5), (loss, ref)

    # --- test 2: multi-block grid, 2-way split axis, tail masking, 'sum' ------------
    B2, C2 = 45, 100                                   # N = 4500 landmarks
    pred2 = 4.0 * jax.random.normal(k4, (B2, C2, D), dtype=jnp.float32)
    target2 = 4.0 * jax.random.normal(k5, (B2, C2, D), dtype=jnp.float32)
    a2 = jax.random.normal(k6, (B2, C2, D, D), dtype=jnp.float32)
    cov2 = jnp.einsum("bcij,bckj->bcik", a2, a2) + 0.25 * jnp.eye(D, dtype=jnp.float32)

    loss_fn2 = jax.jit(functools.partial(
        euclidean_distance_variance_reg,
        alpha=alpha, var_t=var_t, reduction="sum", spatial_dims=D,
        max_tile_sub=16))                              # force several blocks + partial tail
    loss2 = jax.block_until_ready(loss_fn2(pred2, cov2, target2))
    ref2 = _reference_loss(pred2, cov2, target2, alpha=alpha, var_t=var_t,
                           reduction="sum", spatial_dims=D)
    assert jnp.allclose(loss2, ref2, rtol=1e-4, atol=1e-4), (loss2, ref2)

    print("KERNEL_OK")
</pallas_src>

<mosaic_0001>
module attributes {stable_mosaic.version = 11 : i64} {
  func.func @_edvr_kernel(%arg0: i32, %arg1: i32, %arg2: memref<2x8x128xf32, #tpu.memory_space<vmem>>, %arg3: memref<2x8x128xf32, #tpu.memory_space<vmem>>, %arg4: memref<2x8x128xf32, #tpu.memory_space<vmem>>, %arg5: memref<1x1xf32, #tpu.memory_space<smem>>, %arg6: memref<8x128xf32, #tpu.memory_space<vmem>>) attributes {dimension_semantics = [#tpu.dimension_semantics<parallel>, #tpu.dimension_semantics<arbitrary>], iteration_bounds = array<i64: 1, 1>, scalar_prefetch = 0 : i64, scratch_operands = 1 : i64, tpu.core_type = #tpu.core_type<tc>, window_params = [{transform_indices = @transform_0, window_bounds = array<i64: 2, 8, 128>}, {transform_indices = @transform_1, window_bounds = array<i64: 2, 8, 128>}, {transform_indices = @transform_2, window_bounds = array<i64: 2, 8, 128>}, {transform_indices = @transform_3, window_bounds = array<i64: 1, 1>}]} {
    %c0_i32 = arith.constant 0 : i32
    %0 = arith.cmpi eq, %arg1, %c0_i32 : i32
    %1 = arith.extui %0 : i1 to i32
    %c0_i32_0 = arith.constant 0 : i32
    %2 = arith.cmpi ne, %1, %c0_i32_0 : i32
    scf.if %2 {
      %cst_28 = arith.constant 0.000000e+00 : f32
      %48 = vector.broadcast %cst_28 : f32 to vector<8x128xf32>
      %c0_29 = arith.constant 0 : index
      %c0_30 = arith.constant 0 : index
      %49 = vector.load %arg6[%c0_29, %c0_30] : memref<8x128xf32, #tpu.memory_space<vmem>>, vector<8x128xf32>
      tpu.vector_store %arg6[%c0_29, %c0_30], %48 {strides = array<i32>} : memref<8x128xf32, #tpu.memory_space<vmem>>, vector<8x128xf32>,
    } else {
    }
    %c0 = arith.constant 0 : index
    %c0_1 = arith.constant 0 : index
    %c0_2 = arith.constant 0 : index
    %3 = vector.load %arg2[%c0, %c0_1, %c0_2] : memref<2x8x128xf32, #tpu.memory_space<vmem>>, vector<1x8x128xf32>
    %4 = vector.shape_cast %3 : vector<1x8x128xf32> to vector<8x128xf32>
    %c0_3 = arith.constant 0 : index
    %c0_4 = arith.constant 0 : index
    %c0_5 = arith.constant 0 : index
    %5 = vector.load %arg3[%c0_3, %c0_4, %c0_5] : memref<2x8x128xf32, #tpu.memory_space<vmem>>, vector<1x8x128xf32>
    %6 = vector.shape_cast %5 : vector<1x8x128xf32> to vector<8x128xf32>
    %7 = arith.subf %4, %6 : vector<8x128xf32>
    %c0_6 = arith.constant 0 : index
    %c0_7 = arith.constant 0 : index
    %c0_8 = arith.constant 0 : index
    %8 = vector.load %arg4[%c0_6, %c0_7, %c0_8] : memref<2x8x128xf32, #tpu.memory_space<vmem>>, vector<1x8x128xf32>
    %9 = vector.shape_cast %8 : vector<1x8x128xf32> to vector<8x128xf32>
    %cst = arith.constant 5.000000e-01 : f32
    %10 = vector.broadcast %cst : f32 to vector<8x128xf32>
    %11 = arith.subf %9, %10 : vector<8x128xf32>
    %12 = arith.mulf %7, %7 : vector<8x128xf32>
    %13 = arith.mulf %11, %11 : vector<8x128xf32>
    %c1 = arith.constant 1 : index
    %c0_9 = arith.constant 0 : index
    %c0_10 = arith.constant 0 : index
    %14 = vector.load %arg2[%c1, %c0_9, %c0_10] : memref<2x8x128xf32, #tpu.memory_space<vmem>>, vector<1x8x128xf32>
    %15 = vector.shape_cast %14 : vector<1x8x128xf32> to vector<8x128xf32>
    %c1_11 = arith.constant 1 : index
    %c0_12 = arith.constant 0 : index
    %c0_13 = arith.constant 0 : index
    %16 = vector.load %arg3[%c1_11, %c0_12, %c0_13] : memref<2x8x128xf32, #tpu.memory_space<vmem>>, vector<1x8x128xf32>
    %17 = vector.shape_cast %16 : vector<1x8x128xf32> to vector<8x128xf32>
    %18 = arith.subf %15, %17 : vector<8x128xf32>
    %c1_14 = arith.constant 1 : index
    %c0_15 = arith.constant 0 : index
    %c0_16 = arith.constant 0 : index
    %19 = vector.load %arg4[%c1_14, %c0_15, %c0_16] : memref<2x8x128xf32, #tpu.memory_space<vmem>>, vector<1x8x128xf32>
    %20 = vector.shape_cast %19 : vector<1x8x128xf32> to vector<8x128xf32>
    %cst_17 = arith.constant 5.000000e-01 : f32
    %21 = vector.broadcast %cst_17 : f32 to vector<8x128xf32>
    %22 = arith.subf %20, %21 : vector<8x128xf32>
    %23 = arith.mulf %18, %18 : vector<8x128xf32>
    %24 = arith.addf %12, %23 : vector<8x128xf32>
    %25 = arith.mulf %22, %22 : vector<8x128xf32>
    %26 = arith.addf %13, %25 : vector<8x128xf32>
    %27 = math.sqrt %24 : vector<8x128xf32>
    %cst_18 = arith.constant 2.000000e+00 : f32
    %28 = vector.broadcast %cst_18 : f32 to vector<8x128xf32>
    %29 = arith.mulf %28, %26 : vector<8x128xf32>
    %30 = arith.addf %27, %29 : vector<8x128xf32>
    %c1_i32 = arith.constant 1 : i32
    %31 = arith.muli %arg0, %c1_i32 : i32
    %32 = arith.addi %31, %arg1 : i32
    %c8_i32 = arith.constant 8 : i32
    %33 = arith.muli %32, %c8_i32 : i32
    %c8_i32_19 = arith.constant 8 : i32
    %34 = arith.subi %c8_i32_19, %33 : i32
    %35 = tpu.iota {dimensions = array<i32: 0>} : vector<8x128xi32>
    %36 = vector.broadcast %34 : i32 to vector<8x128xi32>
    %37 = arith.cmpi slt, %35, %36 : vector<8x128xi32>
    %cst_20 = arith.constant 0.000000e+00 : f32
    %38 = vector.broadcast %cst_20 : f32 to vector<8x128xf32>
    %39 = arith.select %37, %30, %38 : vector<8x128xi1>, vector<8x128xf32>
    %c0_21 = arith.constant 0 : index
    %c0_22 = arith.constant 0 : index
    %40 = vector.load %arg6[%c0_21, %c0_22] : memref<8x128xf32, #tpu.memory_space<vmem>>, vector<8x128xf32>
    %41 = vector.shape_cast %39 : vector<8x128xf32> to vector<1x8x128xf32>
    %cst_23 = arith.constant dense<0.000000e+00> : vector<8x128xf32>
    %42 = vector.multi_reduction <add>, %41, %cst_23 [0] : vector<1x8x128xf32> to vector<8x128xf32>
    %43 = arith.addf %40, %42 : vector<8x128xf32>
    %c0_24 = arith.constant 0 : index
    %c0_25 = arith.constant 0 : index
    %44 = vector.load %arg6[%c0_24, %c0_25] : memref<8x128xf32, #tpu.memory_space<vmem>>, vector<8x128xf32>
    tpu.vector_store %arg6[%c0_24, %c0_25], %43 {strides = array<i32>} : memref<8x128xf32, #tpu.memory_space<vmem>>, vector<8x128xf32>,
    %c0_i32_26 = arith.constant 0 : i32
    %45 = arith.cmpi eq, %arg1, %c0_i32_26 : i32
    %46 = arith.extui %45 : i1 to i32
    %c0_i32_27 = arith.constant 0 : i32
    %47 = arith.cmpi ne, %46, %c0_i32_27 : i32
    scf.if %47 {
      %c0_28 = arith.constant 0 : index
      %c0_29 = arith.constant 0 : index
      %48 = vector.load %arg6[%c0_28, %c0_29] : memref<8x128xf32, #tpu.memory_space<vmem>>, vector<8x128xf32>
      %49 = vector.shape_cast %48 : vector<8x128xf32> to vector<1x8x128xf32>
      %cst_30 = arith.constant dense<0.000000e+00> : vector<1xf32>
      %50 = vector.multi_reduction <add>, %49, %cst_30 [1, 2] : vector<1x8x128xf32> to vector<1xf32>
      %51 = vector.shape_cast %50 : vector<1xf32> to vector<1x1x1xf32>
      %52 = vector.extract %51[0, 0, 0] : f32 from vector<1x1x1xf32>
      %c0_31 = arith.constant 0 : index
      %c0_32 = arith.constant 0 : index
      %53 = memref.load %arg5[%c0_31, %c0_32] : memref<1x1xf32, #tpu.memory_space<smem>>
      memref.store %52, %arg5[%c0_31, %c0_32] : memref<1x1xf32, #tpu.memory_space<smem>>
    } else {
    }
    return
  }
  func.func @transform_0(%arg0: i32, %arg1: i32) -> (i32, i32, i32) {
    %c1_i32 = arith.constant 1 : i32
    %0 = arith.muli %arg0, %c1_i32 : i32
    %1 = arith.addi %0, %arg1 : i32
    %c0_i32 = arith.constant 0 : i32
    %2 = arith.minsi %1, %c0_i32 : i32
    %c0_i32_0 = arith.constant 0 : i32
    %c0_i32_1 = arith.constant 0 : i32
    %c0_i32_2 = arith.constant 0 : i32
    return %c0_i32_0, %2, %c0_i32_1 : i32, i32, i32
  }
  func.func @transform_1(%arg0: i32, %arg1: i32) -> (i32, i32, i32) {
    %c1_i32 = arith.constant 1 : i32
    %0 = arith.muli %arg0, %c1_i32 : i32
    %1 = arith.addi %0, %arg1 : i32
    %c0_i32 = arith.constant 0 : i32
    %2 = arith.minsi %1, %c0_i32 : i32
    %c0_i32_0 = arith.constant 0 : i32
    %c0_i32_1 = arith.constant 0 : i32
    %c0_i32_2 = arith.constant 0 : i32
    return %c0_i32_0, %2, %c0_i32_1 : i32, i32, i32
  }
  func.func @transform_2(%arg0: i32, %arg1: i32) -> (i32, i32, i32) {
    %c1_i32 = arith.constant 1 : i32
    %0 = arith.muli %arg0, %c1_i32 : i32
    %1 = arith.addi %0, %arg1 : i32
    %c0_i32 = arith.constant 0 : i32
    %2 = arith.minsi %1, %c0_i32 : i32
    %c0_i32_0 = arith.constant 0 : i32
    %c0_i32_1 = arith.constant 0 : i32
    %c0_i32_2 = arith.constant 0 : i32
    return %c0_i32_0, %2, %c0_i32_1 : i32, i32, i32
  }
  func.func @transform_3(%arg0: i32, %arg1: i32) -> (i32, i32) {
    %c0_i32 = arith.constant 0 : i32
    %c0_i32_0 = arith.constant 0 : i32
    return %arg0, %c0_i32 : i32, i32
  }
}

</mosaic_0001>

<bundles_post_ra>
// kernel: euclidean_distance_variance_reg.1
= control target key start
LH: loop header
LB: loop body
LE: loop exit
PB: predicated region body
PF: predicated region fallthrough
CT: control target
= control target key end

     0   :  { %s260_s0 = inlined_call_operand.vmem [shape: f32[2,8,128], index: 0, kind: input, shape index: {}]   ;;  %s261_s1 = inlined_call_operand.vmem [shape: f32[2,8,128], index: 1, kind: input, shape index: {}]   ;;  %s262_s2 = inlined_call_operand.vmem [shape: f32[2,8,128], index: 2, kind: input, shape index: {}]   ;;  %s263_s3 = inlined_call_operand.hbm [shape: f32[1,1], index: 3, kind: output, shape index: {}]  }
   0x1   :  { %v101_v0 = vld [vmem:[%s260_s0] sm:$0xff]  ;;  %v195_v3 = vld [vmem:[%s260_s0 + $0x8] sm:$0xff] }
   0x2   :  { %v102_v1 = vld [vmem:[%s261_s1] sm:$0xff]  ;;  %v196_v4 = vld [vmem:[%s261_s1 + $0x8] sm:$0xff] }
   0x3   :  { %v103_v2 = vsub.f32 %v101_v0, %v102_v1  ;;  %v112_v5 = vsub.f32 %v195_v3, %v196_v4 }
   0x4   :  { %8 = vsyncpa [#allocation4], 0  ;;  %v104_v9 = vld [vmem:[%s262_s2] sm:$0xff]  ;;  %v197_v10 = vld [vmem:[%s262_s2 + $0x8] sm:$0xff]  ;;  %s166_s2 = sshll.u32 %s263_s3, 4  ;;  %s218_s25 = smov [#allocation3]   ;;  %s167_s2 = int_to_ptr.hbm [resolvable:$true] %s166_s2 }
   0x5   :  { %v106_v6 = vmul.f32 %v103_v2, %v103_v2  ;;  %v116_v7 = vmul.f32 %v112_v5, %v112_v5  ;;  %v194_v11 = vadd.f32 -0.5, %v104_v9  ;;  %v198_v12 = vadd.f32 -0.5, %v197_v10 }
   0x7   :  { %v117_v8 = vadd.f32 %v116_v7, %v106_v6  ;;  %v107_v15 = vmul.f32 %v194_v11, %v194_v11  ;;  %v118_v16 = vmul.f32 %v198_v12, %v198_v12 }
   0x9   :  { %202 = vrsqrt.f32 %v117_v8  ;;  %v119_v19 = vadd.f32 %v118_v16, %v107_v15  ;;  %vm127_vm0 = vcmp.eq.f32.partialorder %v117_v8, inf  ;;  %v130_v22 = vand.u32 2147483648, %v117_v8 }
   0xa   :  { %vm129_vm1 = vcmp.eq.f32.partialorder %v117_v8, 0.0 }
   0xb   :  { %v132_v24 = vmul.f32 2.0, %v119_v19 }
   0xf   :  { %v203_v13 = vpop.eup %202 }
  0x10   :  { %v121_v14 = vmul.f32 %v203_v13, %v117_v8 }
  0x12   :  { %v122_v17 = vmul.f32 %v203_v13, %v121_v14 }
  0x14   :  { %v123_v18 = vmul.f32 0.5, %v122_v17 }
  0x16   :  { %v124_v20 = vsub.f32 1.5, %v123_v18 }
  0x18   :  { %v125_v21 = vmul.f32 %v203_v13, %v124_v20 }
  0x1a   :  { %v126_v23 = vmul.f32 %v125_v21, %v117_v8 }
  0x1c   :  { %v128_v25 = vsel %vm127_vm0, %v117_v8, %v126_v23 }
  0x1d   :  { %v131_v26 = vsel %vm129_vm1, %v130_v22, %v128_v25 }
  0x1e   :  { %v133_v27 = vadd.f32 %v132_v24, %v131_v26 }
  0x20   :  { %150 = vadd.xlane.f32.xlu0 %v133_v27 }
  0x93   :  { %v151_v28 = vpop.xlane.xlu0 %150 }
  0x94   :  { %v152_v29 = vrot.slane %v151_v28, 4 }
  0x96   :  { %v153_v30 = vadd.f32 %v152_v29, %v151_v28 }
  0x98   :  { %v154_v31 = vrot.slane %v153_v30, 2 }
  0x9a   :  { %v155_v32 = vadd.f32 %v154_v31, %v153_v30 }
  0x9c   :  { %v156_v33 = vrot.slane %v155_v32, 1 }
  0x9e   :  { %v157_v34 = vadd.f32 %v156_v33, %v155_v32 }
  0xa0   :  { %199 = vpush %v157_v34 }
  0xd1   :  { %s200_s24 = spop %199 }
  0xd2   :  { %160 = sst [smem:[#allocation3]] %s200_s24 }
  0xd3   :  { %169 = dma.smem_to_hbm %s218_s25, 16, %s167_s2, [#allocation4]  }
  0xd4   :  { %216 = dma.done.wait [#allocation4], 16  }
  0xd5   :  { %217 = vsyncadd [#allocation4], 4294967280 }
  0xd6   :  { %174 = sfence }
  0xd7   :  { %175 = vsyncpa [#allocation4], 1 }

</bundles_post_ra>
